<compile_context>
chip_gen: v5e
topology: v5e:2x2
jax: 0.10.0
libtpu: 0.0.40
codegen_flags: <defaults>
</compile_context>

<pallas_src>
import jax
import jax.numpy as jnp
from jax.experimental import pallas as pl
from jax.experimental.pallas import tpu as pltpu


def _round_up(n, m):
    return ((n + m - 1) // m) * m


def _mish(x):
    # mish(x) = x * tanh(softplus(x)) = x * (t^2 + 2t) / (t^2 + 2t + 2), t = e^x.
    # One exp + one approx reciprocal (EUP) instead of exp/log1p/tanh (3 ops).
    # Clamp the exp argument so t^2 cannot overflow f32; for x > 20 the ratio
    # is 1 to f32 precision, so mish(x) == x there, as desired.
    t = jnp.exp(jnp.minimum(x, 20.0))
    num = t * (t + 2.0)
    return x * num * pl.reciprocal(num + 2.0, approx=True)


def _classifier_kernel(x_ref, w1_ref, b1_ref, w2_ref, b2_ref, o_ref):
    # Linear(H, H): bf16 operands, f32 accumulation on the MXU.
    h = jnp.dot(x_ref[...], w1_ref[...], preferred_element_type=jnp.float32)
    h = _mish(h + b1_ref[...])                     # bias + Mish in f32 (VPU/EUP)
    # Linear(H, C_pad): lane-dense padded output, bf16 operands, f32 accumulate.
    o = jnp.dot(h.astype(w2_ref.dtype), w2_ref[...],
                preferred_element_type=jnp.float32) + b2_ref[...]
    o_ref[...] = o.astype(o_ref.dtype)


def prepare_classifier_params(w1, b1, w2, b2):
    """One-time weight prep: bf16 matmul operands, lane-dense padded classes."""
    H, C = w2.shape
    C_pad = _round_up(C, 128)
    return {
        "w1": w1.astype(jnp.bfloat16),                                    # (H, H)
        "b1": b1.astype(jnp.float32).reshape(1, H),                       # (1, H)
        "w2": jnp.zeros((H, C_pad), jnp.bfloat16).at[:, :C].set(w2.astype(jnp.bfloat16)),
        "b2": jnp.zeros((1, C_pad), jnp.float32).at[:, :C].set(b2.astype(jnp.float32)),
        "n_classes": C,
    }


def _choose_block_m(B, block_m):
    if B <= 16:
        return 16                                  # native bf16 (16, 128) tile
    # >= 2 grid steps so both v7x TensorCores get work; cap at block_m.
    return min(block_m, _round_up(pl.cdiv(B, 2), 16))


def emo_classifier(x, prep, *, block_m=1024):
    """Pallas classifier head: x (B, H) -> logits (B, n_classes) in f32."""
    B, H = x.shape
    C = prep["n_classes"]
    C_pad = prep["w2"].shape[1]

    bm = _choose_block_m(B, block_m)
    grid_m = pl.cdiv(B, bm)          # ragged last M tile is masked by Pallas

    flops = 2 * B * H * (H + C_pad)
    transcendentals = 2 * B * H      # one exp + one approx reciprocal per element
    bytes_accessed = (B * H * 2                          # x (bf16)
                      + prep["w1"].size * 2 + prep["w2"].size * 2
                      + prep["b1"].size * 4 + prep["b2"].size * 4
                      + B * C_pad * 4)                   # logits (f32)

    resident = lambda i: (0, 0)
    out = pl.pallas_call(
        _classifier_kernel,
        out_shape=jax.ShapeDtypeStruct((B, C_pad), jnp.float32),
        grid=(grid_m,),
        in_specs=[
            # Activations streamed over the batch (double-buffered by default).
            pl.BlockSpec((bm, H), lambda i: (i, 0)),
            # Weights / biases: block index never changes -> single buffer.
            pl.BlockSpec((H, H), resident, pipeline_mode=pl.Buffered(1)),
            pl.BlockSpec((1, H), resident, pipeline_mode=pl.Buffered(1)),
            pl.BlockSpec((H, C_pad), resident, pipeline_mode=pl.Buffered(1)),
            pl.BlockSpec((1, C_pad), resident, pipeline_mode=pl.Buffered(1)),
        ],
        out_specs=pl.BlockSpec((bm, C_pad), lambda i: (i, 0)),
        compiler_params=pltpu.CompilerParams(
            dimension_semantics=("parallel",)),          # megacore split on v7x
        cost_estimate=pl.CostEstimate(
            flops=flops, transcendentals=transcendentals,
            bytes_accessed=bytes_accessed),
    )(x.astype(jnp.bfloat16), prep["w1"], prep["b1"], prep["w2"], prep["b2"])

    # TODO(synk): for very large H (bf16 w1 >~ 16-24 MiB) on v7x (64 MiB VMEM),
    # add a K-tiling grid axis for the first matmul with a VMEM accumulator.
    return out[:, :C]                                    # strip class padding


# TODO(synk): the real `base_model` (e.g. a HF transformer) is external to the
# module spec; a deterministic embedding-lookup stub stands in for it here.
def base_model_stub(X, attention_mask, emb_table):
    """Returns a 1-tuple whose element is last_hidden_state (B, S, H)."""
    hidden = emb_table[X]                                      # (B, S, H)
    hidden = hidden * attention_mask[..., None].astype(hidden.dtype)
    return (hidden,)


def emo_model_forward(input_, params):
    """Mirror of EmoModel.forward: input_ = (X, attention_mask)."""
    X, attention_mask = input_
    hidden_states = base_model_stub(X, attention_mask, params["emb"])
    # CLS token; cast to bf16 here (fuses with the slice) so the kernel's
    # activation input needs no separate pad/cast round-trip through HBM.
    cls = hidden_states[0][:, 0, :].astype(jnp.bfloat16)       # (B, H)
    return emo_classifier(cls, params["classifier"])


if __name__ == "__main__":
    # Small shapes consistent with the module (H stands in for 768).
    B, S, H, C, VOCAB = 2, 8, 256, 4, 32

    key = jax.random.PRNGKey(0)
    k_emb, k_w1, k_w2, k_x = jax.random.split(key, 4)

    # Linear weights ~ N(0, 0.02), biases zeroed (as in EmoModel.__init__),
    # stored transposed (in, out) so the kernel computes x @ W.
    emb = jax.random.normal(k_emb, (VOCAB, H), jnp.float32)
    w1 = jax.random.normal(k_w1, (H, H), jnp.float32) * 0.02
    b1 = jnp.zeros((H,), jnp.float32)
    w2 = jax.random.normal(k_w2, (H, C), jnp.float32) * 0.02
    b2 = jnp.zeros((C,), jnp.float32)

    params = {
        "emb": emb,
        # One-time parameter preparation (bf16 cast + lane-dense padding).
        "classifier": prepare_classifier_params(w1, b1, w2, b2),
    }

    # Example inputs: token ids + attention mask.
    X = jax.random.randint(k_x, (B, S), 0, VOCAB, dtype=jnp.int32)
    attention_mask = jnp.ones((B, S), jnp.int32)

    out = emo_model_forward((X, attention_mask), params)
    out = jax.block_until_ready(out)
    assert out.shape == (B, C) and out.dtype == jnp.float32

    # Reference: same bf16-input / f32-accumulate matmul recipe, canonical
    # softplus+tanh Mish (independent of the kernel's exp/reciprocal form).
    cls = base_model_stub(X, attention_mask, emb)[0][:, 0, :]
    h_ref = jnp.dot(cls.astype(jnp.bfloat16), w1.astype(jnp.bfloat16),
                    preferred_element_type=jnp.float32) + b1[None, :]
    h_ref = h_ref * jnp.tanh(jax.nn.softplus(h_ref))
    ref = jnp.dot(h_ref.astype(jnp.bfloat16), w2.astype(jnp.bfloat16),
                  preferred_element_type=jnp.float32) + b2[None, :]
    assert jnp.allclose(out, ref, atol=2e-4, rtol=2e-2), (out, ref)

    print("KERNEL_OK")
</pallas_src>

<mosaic_0001>
module attributes {stable_mosaic.version = 11 : i64} {
  func.func @_classifier_kernel(%arg0: i32, %arg1: memref<16x256xbf16, #tpu.memory_space<vmem>>, %arg2: memref<256x256xbf16, #tpu.memory_space<vmem>>, %arg3: memref<1x256xf32, #tpu.memory_space<vmem>>, %arg4: memref<256x128xbf16, #tpu.memory_space<vmem>>, %arg5: memref<1x128xf32, #tpu.memory_space<vmem>>, %arg6: memref<16x128xf32, #tpu.memory_space<vmem>>) attributes {dimension_semantics = [#tpu.dimension_semantics<parallel>], iteration_bounds = array<i64: 1>, scalar_prefetch = 0 : i64, scratch_operands = 0 : i64, tpu.core_type = #tpu.core_type<tc>, window_params = [{transform_indices = @transform_0, window_bounds = array<i64: 16, 256>}, {pipeline_mode = #tpu.pipeline_mode<synchronous>, transform_indices = @transform_1, window_bounds = array<i64: 256, 256>}, {pipeline_mode = #tpu.pipeline_mode<synchronous>, transform_indices = @transform_2, window_bounds = array<i64: 1, 256>}, {pipeline_mode = #tpu.pipeline_mode<synchronous>, transform_indices = @transform_3, window_bounds = array<i64: 256, 128>}, {pipeline_mode = #tpu.pipeline_mode<synchronous>, transform_indices = @transform_4, window_bounds = array<i64: 1, 128>}, {transform_indices = @transform_5, window_bounds = array<i64: 16, 128>}]} {
    %c0 = arith.constant 0 : index
    %c0_0 = arith.constant 0 : index
    %0 = vector.load %arg1[%c0, %c0_0] : memref<16x256xbf16, #tpu.memory_space<vmem>>, vector<16x256xbf16>
    %c0_1 = arith.constant 0 : index
    %c0_2 = arith.constant 0 : index
    %1 = vector.load %arg2[%c0_1, %c0_2] : memref<256x256xbf16, #tpu.memory_space<vmem>>, vector<256x256xbf16>
    %cst = arith.constant dense<0.000000e+00> : vector<16x256xf32>
    %2 = tpu.matmul %0, %1, %cst {dimension_numbers = #tpu.dot_dimension_numbers<[1], [0], [0], [1], [0, 0, 1, 1], [], []>} : vector<16x256xbf16>, vector<256x256xbf16>, vector<16x256xf32> -> vector<16x256xf32>
    %c0_3 = arith.constant 0 : index
    %c0_4 = arith.constant 0 : index
    %3 = vector.load %arg3[%c0_3, %c0_4] : memref<1x256xf32, #tpu.memory_space<vmem>>, vector<1x256xf32>
    %4 = vector.broadcast %3 : vector<1x256xf32> to vector<16x256xf32>
    %5 = arith.addf %2, %4 : vector<16x256xf32>
    %cst_5 = arith.constant 2.000000e+01 : f32
    %6 = vector.broadcast %cst_5 : f32 to vector<16x256xf32>
    %7 = arith.minimumf %5, %6 : vector<16x256xf32>
    %8 = math.exp %7 : vector<16x256xf32>
    %cst_6 = arith.constant 2.000000e+00 : f32
    %9 = vector.broadcast %cst_6 : f32 to vector<16x256xf32>
    %10 = arith.addf %8, %9 : vector<16x256xf32>
    %11 = arith.mulf %8, %10 : vector<16x256xf32>
    %12 = arith.mulf %5, %11 : vector<16x256xf32>
    %cst_7 = arith.constant 2.000000e+00 : f32
    %13 = vector.broadcast %cst_7 : f32 to vector<16x256xf32>
    %14 = arith.addf %11, %13 : vector<16x256xf32>
    %15 = tpu.reciprocal %14 {approx = true} : vector<16x256xf32> -> vector<16x256xf32>
    %16 = arith.mulf %12, %15 : vector<16x256xf32>
    %17 = arith.truncf %16 : vector<16x256xf32> to vector<16x256xbf16>
    %c0_8 = arith.constant 0 : index
    %c0_9 = arith.constant 0 : index
    %18 = vector.load %arg4[%c0_8, %c0_9] : memref<256x128xbf16, #tpu.memory_space<vmem>>, vector<256x128xbf16>
    %cst_10 = arith.constant dense<0.000000e+00> : vector<16x128xf32>
    %19 = tpu.matmul %17, %18, %cst_10 {dimension_numbers = #tpu.dot_dimension_numbers<[1], [0], [0], [1], [0, 0, 1, 1], [], []>} : vector<16x256xbf16>, vector<256x128xbf16>, vector<16x128xf32> -> vector<16x128xf32>
    %c0_11 = arith.constant 0 : index
    %c0_12 = arith.constant 0 : index
    %20 = vector.load %arg5[%c0_11, %c0_12] : memref<1x128xf32, #tpu.memory_space<vmem>>, vector<1x128xf32>
    %21 = vector.broadcast %20 : vector<1x128xf32> to vector<16x128xf32>
    %22 = arith.addf %19, %21 : vector<16x128xf32>
    %c0_13 = arith.constant 0 : index
    %c0_14 = arith.constant 0 : index
    %23 = vector.load %arg6[%c0_13, %c0_14] : memref<16x128xf32, #tpu.memory_space<vmem>>, vector<16x128xf32>
    tpu.vector_store %arg6[%c0_13, %c0_14], %22 {strides = array<i32>} : memref<16x128xf32, #tpu.memory_space<vmem>>, vector<16x128xf32>,
    return
  }
  func.func @transform_0(%arg0: i32) -> (i32, i32) {
    %c0_i32 = arith.constant 0 : i32
    %c0_i32_0 = arith.constant 0 : i32
    return %arg0, %c0_i32 : i32, i32
  }
  func.func @transform_1(%arg0: i32) -> (i32, i32) {
    %c0_i32 = arith.constant 0 : i32
    %c0_i32_0 = arith.constant 0 : i32
    %c0_i32_1 = arith.constant 0 : i32
    return %c0_i32, %c0_i32_0 : i32, i32
  }
  func.func @transform_2(%arg0: i32) -> (i32, i32) {
    %c0_i32 = arith.constant 0 : i32
    %c0_i32_0 = arith.constant 0 : i32
    %c0_i32_1 = arith.constant 0 : i32
    return %c0_i32, %c0_i32_0 : i32, i32
  }
  func.func @transform_3(%arg0: i32) -> (i32, i32) {
    %c0_i32 = arith.constant 0 : i32
    %c0_i32_0 = arith.constant 0 : i32
    %c0_i32_1 = arith.constant 0 : i32
    return %c0_i32, %c0_i32_0 : i32, i32
  }
  func.func @transform_4(%arg0: i32) -> (i32, i32) {
    %c0_i32 = arith.constant 0 : i32
    %c0_i32_0 = arith.constant 0 : i32
    %c0_i32_1 = arith.constant 0 : i32
    return %c0_i32, %c0_i32_0 : i32, i32
  }
  func.func @transform_5(%arg0: i32) -> (i32, i32) {
    %c0_i32 = arith.constant 0 : i32
    %c0_i32_0 = arith.constant 0 : i32
    return %arg0, %c0_i32 : i32, i32
  }
}

</mosaic_0001>

<bundles_post_ra>
// kernel: tpu_custom_call.1
= control target key start
LH: loop header
LB: loop body
LE: loop exit
PB: predicated region body
PF: predicated region fallthrough
CT: control target
= control target key end

     0   :  { %10 = vsyncpa [#allocation3], 0  ;;  %s1053_s0 = inlined_call_operand.hbm [shape: bf16[2,256], index: 0, kind: input, shape index: {}]   ;;  %s1054_s1 = inlined_call_operand.hbm [shape: bf16[256,256], index: 1, kind: input, shape index: {}]   ;;  %s1055_s2 = inlined_call_operand.hbm [shape: f32[1,256], index: 2, kind: input, shape index: {}]   ;;  %s1056_s3 = inlined_call_operand.hbm [shape: bf16[256,128], index: 3, kind: input, shape index: {}]   ;;  %s1057_s4 = inlined_call_operand.vmem [shape: f32[1,128], index: 4, kind: input, shape index: {}]   ;;  %s1058_s5 = inlined_call_operand.hbm [shape: f32[2,128], index: 5, kind: output, shape index: {}]  }
   0x1   :  { %11 = vsyncpa [#allocation6], 0 }
   0x2   :  { %12 = vsyncpa [#allocation9], 0 }
   0x3   :  { %13 = vsyncpa [#allocation4], 0  ;;  %s31_s20 = sshll.u32 %s1054_s1, 4  ;;  %s32_s20 = int_to_ptr.hbm [resolvable:$true] %s31_s20 }
   0x4   :  { %17 = vsyncadd [#allocation3], 224  ;;  %s988_s21 = smov [#allocation5]   ;;  %s18_s25 = sshll.u32 %s1053_s0, 4  ;;  %s19_s25 = int_to_ptr.hbm [resolvable:$true] %s18_s25 }
   0x5   :  { %s33_s22 = sshll.u32 %s988_s21, 4  ;;  %s989_s26 = smov 128   ;;  %s34_s22 = int_to_ptr.vmem [resolvable:$true] %s33_s22 }
   0x6   :  { %s990_s27 = smov 8   ;;  %s991_s28 = smov [#allocation2]  }
   0x7   :  { %39 = dma.hbm_to_vmem [thread:$0]  %s32_s20, 4096, %s34_s22, [#allocation6], %s989_s26, %s989_s26, %s990_s27  }
   0x8   :  { %s20_s29 = sshll.u32 %s991_s28, 4  ;;  %s992_s30 = smov 32   ;;  %s21_s29 = int_to_ptr.vmem [resolvable:$true] %s20_s29 }
   0x9   :  { %s993_s6 = smov 2   ;;  %s45_s8 = sshll.u32 %s1055_s2, 4  ;;  %s46_s8 = int_to_ptr.hbm [resolvable:$true] %s45_s8 }
   0xa   :  { %26 = dma.hbm_to_vmem [thread:$0]  %s19_s25, 32, %s21_s29, [#allocation3], %s992_s30, %s992_s30, %s993_s6  }
   0xb   :  { %s994_s9 = smov [#allocation7]   ;;  %s55_s12 = sshll.u32 %s1056_s3, 4  ;;  %s56_s12 = int_to_ptr.hbm [resolvable:$true] %s55_s12 }
   0xc   :  { %s47_s0 = sshll.u32 %s994_s9, 4  ;;  %s995_s13 = smov [#allocation8]   ;;  %s48_s0 = int_to_ptr.vmem [resolvable:$true] %s47_s0 }
   0xd   :  { %50 = dma.hbm_to_vmem [thread:$0]  %s46_s8, 32, %s48_s0, [#allocation6]  }
   0xe   :  { %s57_s14 = sshll.u32 %s995_s13, 4  ;;  %s996_s15 = smov 64   ;;  %s58_s14 = int_to_ptr.vmem [resolvable:$true] %s57_s14 }
   0xf   :  { %s997_s16 = smov 4  }
  0x10   :  { %63 = dma.hbm_to_vmem [thread:$0]  %s56_s12, 2048, %s58_s14, [#allocation9], %s996_s15, %s996_s15, %s997_s16  }
  0x11   :  { %980 = dma.done.wait [#allocation3], 256  }
  0x12   :  { %981 = vsyncadd [#allocation3], 4294967040 }
  0x13   :  { %982 = dma.done.wait [#allocation6], 4128  }
  0x14   :  { %983 = vsyncadd [#allocation6], 4294963168 }
  0x15   :  { %984 = dma.done.wait [#allocation9], 2048  }
  0x16   :  { %985 = vsyncadd [#allocation9], 4294965248  ;;  %v650_v0 = vld [vmem:[#allocation5 + $0x70] sm:$0xf]  ;;  %v799_v1 = vld [vmem:[#allocation5 + $0x74] sm:$0xf0] }
  0x17   :  { %v714_v2 = vld [vmem:[#allocation5 + $0xf0] sm:$0xf]  ;;  %v651_v3 = vor.u32 %v799_v1, %v650_v0  ;;  %v815_v4 = vld [vmem:[#allocation5 + $0xf4] sm:$0xf0]  ;;  %v798_v5 = vld [vmem:[#allocation5 + $0x74] sm:$0xf] }
  0x18   :  { %v652_v6 = vld [vmem:[#allocation5 + $0x78] sm:$0xf0]  ;;  %v715_v7 = vor.u32 %v815_v4, %v714_v2  ;;  %v814_v9 = vld [vmem:[#allocation5 + $0xf4] sm:$0xf]  ;;  %v642_v11 = vld [vmem:[#allocation5 + $0x60] sm:$0xf] }
  0x19   :  { %v655_v8 = vor.u32 %v798_v5, %v652_v6  ;;  %v716_v10 = vld [vmem:[#allocation5 + $0xf8] sm:$0xf0]  ;;  %315 = vmatpush.bf16.msra.mxu0 %v651_v3  ;;  %v797_v13 = vld [vmem:[#allocation5 + $0x64] sm:$0xf0]  ;;  %v706_v14 = vld [vmem:[#allocation5 + $0xe0] sm:$0xf] }
  0x1a   :  { %v719_v12 = vor.u32 %v814_v9, %v716_v10  ;;  %v813_v15 = vld [vmem:[#allocation5 + $0xe4] sm:$0xf0]  ;;  %329 = vmatpush.bf16.msra.mxu1 %v715_v7  ;;  %v643_v16 = vor.u32 %v797_v13, %v642_v11  ;;  %v796_v18 = vld [vmem:[#allocation5 + $0x64] sm:$0xf]  ;;  %v644_v19 = vld [vmem:[#allocation5 + $0x68] sm:$0xf0] }
  0x1b   :  { %343 = vmatpush.bf16.msra.mxu2 %v655_v8  ;;  %v707_v17 = vor.u32 %v813_v15, %v706_v14  ;;  %v812_v20 = vld [vmem:[#allocation5 + $0xe4] sm:$0xf]  ;;  %v647_v21 = vor.u32 %v796_v18, %v644_v19  ;;  %v708_v22 = vld [vmem:[#allocation5 + $0xe8] sm:$0xf0]  ;;  %v634_v23 = vld [vmem:[#allocation5 + $0x50] sm:$0xf] }
  0x1c   :  { %357 = vmatpush.bf16.msra.mxu3 %v719_v12  ;;  %v795_v24 = vld [vmem:[#allocation5 + $0x54] sm:$0xf0]  ;;  %v711_v25 = vor.u32 %v812_v20, %v708_v22  ;;  %v698_v26 = vld [vmem:[#allocation5 + $0xd0] sm:$0xf]  ;;  %v794_v28 = vld [vmem:[#allocation5 + $0x54] sm:$0xf] }
  0x1d   :  { %v811_v27 = vld [vmem:[#allocation5 + $0xd4] sm:$0xf0]  ;;  %316 = vmatpush.bf16.msra.mxu0 %v643_v16  ;;  %v635_v29 = vor.u32 %v795_v24, %v634_v23  ;;  %v636_v30 = vld [vmem:[#allocation5 + $0x58] sm:$0xf0]  ;;  %v810_v31 = vld [vmem:[#allocation5 + $0xd4] sm:$0xf] }
  0x1e   :  { %v700_v32 = vld [vmem:[#allocation5 + $0xd8] sm:$0xf0]  ;;  %330 = vmatpush.bf16.msra.mxu1 %v707_v17  ;;  %v699_v33 = vor.u32 %v811_v27, %v698_v26  ;;  %v639_v34 = vor.u32 %v794_v28, %v636_v30  ;;  %v626_v35 = vld [vmem:[#allocation5 + $0x40] sm:$0xf]  ;;  %v793_v36 = vld [vmem:[#allocation5 + $0x44] sm:$0xf0] }
  0x1f   :  { %344 = vmatpush.bf16.msra.mxu2 %v647_v21  ;;  %v690_v37 = vld [vmem:[#allocation5 + $0xc0] sm:$0xf]  ;;  %v703_v38 = vor.u32 %v810_v31, %v700_v32  ;;  %v809_v39 = vld [vmem:[#allocation5 + $0xc4] sm:$0xf0]  ;;  %v792_v40 = vld [vmem:[#allocation5 + $0x44] sm:$0xf]  ;;  %v627_v44 = vor.u32 %v793_v36, %v626_v35 }
  0x20   :  { %358 = vmatpush.bf16.msra.mxu3 %v711_v25  ;;  %v628_v41 = vld [vmem:[#allocation5 + $0x48] sm:$0xf0]  ;;  %v808_v42 = vld [vmem:[#allocation5 + $0xc4] sm:$0xf]  ;;  %v691_v45 = vor.u32 %v809_v39, %v690_v37  ;;  %v618_v47 = vld [vmem:[#allocation5 + $0x30] sm:$0xf] }
  0x21   :  { %v692_v43 = vld [vmem:[#allocation5 + $0xc8] sm:$0xf0]  ;;  %317 = vmatpush.bf16.msra.mxu0 %v635_v29  ;;  %v631_v46 = vor.u32 %v792_v40, %v628_v41  ;;  %v791_v48 = vld [vmem:[#allocation5 + $0x34] sm:$0xf0]  ;;  %v682_v49 = vld [vmem:[#allocation5 + $0xb0] sm:$0xf] }
  0x22   :  { %331 = vmatpush.bf16.msra.mxu1 %v699_v33  ;;  %v695_v50 = vor.u32 %v808_v42, %v692_v43  ;;  %v807_v51 = vld [vmem:[#allocation5 + $0xb4] sm:$0xf0]  ;;  %v790_v52 = vld [vmem:[#allocation5 + $0x34] sm:$0xf]  ;;  %v620_v53 = vld [vmem:[#allocation5 + $0x38] sm:$0xf0]  ;;  %v619_v56 = vor.u32 %v791_v48, %v618_v47 }
  0x23   :  { %345 = vmatpush.bf16.msra.mxu2 %v639_v34  ;;  %v806_v54 = vld [vmem:[#allocation5 + $0xb4] sm:$0xf]  ;;  %v684_v55 = vld [vmem:[#allocation5 + $0xb8] sm:$0xf0]  ;;  %v683_v57 = vor.u32 %v807_v51, %v682_v49  ;;  %v623_v58 = vor.u32 %v790_v52, %v620_v53  ;;  %v610_v59 = vld [vmem:[#allocation5 + $0x20] sm:$0xf] }
  0x24   :  { %359 = vmatpush.bf16.msra.mxu3 %v703_v38  ;;  %v789_v60 = vld [vmem:[#allocation5 + $0x24] sm:$0xf0]  ;;  %v674_v61 = vld [vmem:[#allocation5 + $0xa0] sm:$0xf]  ;;  %v687_v62 = vor.u32 %v806_v54, %v684_v55  ;;  %v788_v0 = vld [vmem:[#allocation5 + $0x24] sm:$0xf] }
  0x25   :  { %318 = vmatpush.bf16.msra.mxu0 %v627_v44  ;;  %v805_v63 = vld [vmem:[#allocation5 + $0xa4] sm:$0xf0]  ;;  %v612_v1 = vld [vmem:[#allocation5 + $0x28] sm:$0xf0]  ;;  %v804_v2 = vld [vmem:[#allocation5 + $0xa4] sm:$0xf]  ;;  %v611_v4 = vor.u32 %v789_v60, %v610_v59 }
  0x26   :  { %332 = vmatpush.bf16.msra.mxu1 %v691_v45  ;;  %v676_v3 = vld [vmem:[#allocation5 + $0xa8] sm:$0xf0]  ;;  %v602_v5 = vld [vmem:[#allocation5 + $0x10] sm:$0xf]  ;;  %v787_v6 = vld [vmem:[#allocation5 + $0x14] sm:$0xf0]  ;;  %v675_v8 = vor.u32 %v805_v63, %v674_v61  ;;  %v615_v9 = vor.u32 %v788_v0, %v612_v1 }
  0x27   :  { %346 = vmatpush.bf16.msra.mxu2 %v631_v46  ;;  %v666_v7 = vld [vmem:[#allocation5 + $0x90] sm:$0xf]  ;;  %v803_v10 = vld [vmem:[#allocation5 + $0x94] sm:$0xf0]  ;;  %v786_v11 = vld [vmem:[#allocation5 + $0x14] sm:$0xf]  ;;  %v679_v13 = vor.u32 %v804_v2, %v676_v3  ;;  %v603_v20 = vor.u32 %v787_v6, %v602_v5 }
  0x28   :  { %360 = vmatpush.bf16.msra.mxu3 %v695_v50  ;;  %v604_v12 = vld [vmem:[#allocation5 + $0x18] sm:$0xf0]  ;;  %v802_v14 = vld [vmem:[#allocation5 + $0x94] sm:$0xf]  ;;  %v82_v16 = vld [vmem:[#allocation2] sm:$0x3]  ;;  %v667_v26 = vor.u32 %v803_v10, %v666_v7 }
  0x29   :  { %319 = vmatpush.bf16.msra.mxu0 %v619_v56  ;;  %v668_v15 = vld [vmem:[#allocation5 + $0x98] sm:$0xf0]  ;;  %v594_v17 = vld [vmem:[#allocation5] sm:$0xf]  ;;  %v785_v18 = vld [vmem:[#allocation5 + $0x4] sm:$0xf0]  ;;  %v607_v27 = vor.u32 %v786_v11, %v604_v12 }
  0x2a   :  { %333 = vmatpush.bf16.msra.mxu1 %v683_v57  ;;  %v83_v19 = vld [vmem:[#allocation2 + $0x2] sm:$0x3]  ;;  %v658_v21 = vld [vmem:[#allocation5 + $0x80] sm:$0xf]  ;;  %v801_v22 = vld [vmem:[#allocation5 + $0x84] sm:$0xf0]  ;;  %v671_v29 = vor.u32 %v802_v14, %v668_v15  ;;  %v595_v34 = vor.u32 %v785_v18, %v594_v17 }
  0x2b   :  { %347 = vmatpush.bf16.msra.mxu2 %v623_v58  ;;  %v784_v23 = vld [vmem:[#allocation5 + $0x4] sm:$0xf]  ;;  %v596_v24 = vld [vmem:[#allocation5 + $0x8] sm:$0xf0]  ;;  %v84_v25 = vld [vmem:[#allocation2 + $0x4] sm:$0x3]  ;;  %v659_v36 = vor.u32 %v801_v22, %v658_v21 }
  0x2c   :  { %361 = vmatpush.bf16.msra.mxu3 %v687_v62  ;;  %v85_v28 = vld [vmem:[#allocation2 + $0x6] sm:$0x3]  ;;  %129 = vst [vmem:[#allocation1] ss:$9 sm:$0xff] %v82_v16  ;;  %v800_v30 = vld [vmem:[#allocation5 + $0x84] sm:$0xf]  ;;  %v599_v37 = vor.u32 %v784_v23, %v596_v24 }
  0x2d   :  { %320 = vmatpush.bf16.msra.mxu0 %v611_v4  ;;  %v86_v31 = vld [vmem:[#allocation2 + $0x8] sm:$0x3]  ;;  %132 = vst [vmem:[#allocation1 + $0x1] ss:$9 sm:$0xff] %v83_v19  ;;  %v660_v32 = vld [vmem:[#allocation5 + $0x88] sm:$0xf0] }
  0x2e   :  { %334 = vmatpush.bf16.msra.mxu1 %v675_v8  ;;  %v87_v33 = vld [vmem:[#allocation2 + $0xa] sm:$0x3]  ;;  %135 = vst [vmem:[#allocation1 + $0x2] ss:$9 sm:$0xff] %v84_v25  ;;  %v88_v35 = vld [vmem:[#allocation2 + $0xc] sm:$0x3]  ;;  %v663_v39 = vor.u32 %v800_v30, %v660_v32 }
  0x2f   :  { %348 = vmatpush.bf16.msra.mxu2 %v615_v9  ;;  %138 = vst [vmem:[#allocation1 + $0x3] ss:$9 sm:$0xff] %v85_v28  ;;  %v89_v38 = vld [vmem:[#allocation2 + $0xe] sm:$0x3]  ;;  %v822_v43 = vld [vmem:[#allocation8 + $0x30] sm:$0xff]  ;;  %v821_v45 = vld [vmem:[#allocation8 + $0x28] sm:$0xff] }
  0x30   :  { %362 = vmatpush.bf16.msra.mxu3 %v679_v13  ;;  %141 = vst [vmem:[#allocation1 + $0x4] ss:$9 sm:$0xff] %v86_v31  ;;  %v823_v42 = vld [vmem:[#allocation8 + $0x38] sm:$0xff]  ;;  %v830_v46 = vld [vmem:[#allocation8 + $0x70] sm:$0xff]  ;;  %v820_v47 = vld [vmem:[#allocation8 + $0x20] sm:$0xff] }
  0x31   :  { %321 = vmatpush.bf16.msra.mxu0 %v603_v20  ;;  %144 = vst [vmem:[#allocation1 + $0x5] ss:$9 sm:$0xff] %v87_v33  ;;  %v831_v44 = vld [vmem:[#allocation8 + $0x78] sm:$0xff]  ;;  %v829_v48 = vld [vmem:[#allocation8 + $0x68] sm:$0xff]  ;;  %v828_v51 = vld [vmem:[#allocation8 + $0x60] sm:$0xff] }
  0x32   :  { %335 = vmatpush.bf16.msra.mxu1 %v667_v26  ;;  %147 = vst [vmem:[#allocation1 + $0x6] ss:$9 sm:$0xff] %v88_v35  ;;  %v819_v49 = vld [vmem:[#allocation8 + $0x18] sm:$0xff]  ;;  %v818_v53 = vld [vmem:[#allocation8 + $0x10] sm:$0xff]  ;;  %v817_v58 = vld [vmem:[#allocation8 + $0x8] sm:$0xff] }
  0x33   :  { %349 = vmatpush.bf16.msra.mxu2 %v607_v27  ;;  %150 = vst [vmem:[#allocation1 + $0x7] ss:$9 sm:$0xff] %v89_v38  ;;  %v122_v50 = vld [vmem:[#allocation7] sm:$0x3]  ;;  %v826_v60 = vld [vmem:[#allocation8 + $0x50] sm:$0xff]  ;;  %v816_v63 = vld [vmem:[#allocation8] sm:$0xff] }
  0x34   :  { %363 = vmatpush.bf16.msra.mxu3 %v671_v29  ;;  %v124_v52 = vperm.slane %v122_v50, 0  ;;  %v827_v54 = vld [vmem:[#allocation8 + $0x58] sm:$0xff]  ;;  %v125_v61 = vperm.slane %v122_v50, 1  ;;  %v825_v3 = vld [vmem:[#allocation8 + $0x48] sm:$0xff]  ;;  %v824_v10 = vld [vmem:[#allocation8 + $0x40] sm:$0xff] }
  0x35   :  { %322 = vmatpush.bf16.msra.mxu0 %v595_v34 }
  0x36   :  { %336 = vmatpush.bf16.msra.mxu1 %v659_v36 }
  0x37   :  { %350 = vmatpush.bf16.msra.mxu2 %v599_v37 }
  0x38   :  { %364 = vmatpush.bf16.msra.mxu3 %v663_v39 }
  0x39   :  { %541 = vmatpush.bf16.msrb.mxu0 %v823_v42 }
  0x3a   :  { %v151_v40 = vld [vmem:[#allocation1] sm:$0xff]  ;;  %v152_v41 = vld [vmem:[#allocation1 + $0x9] sm:$0xff]  ;;  %555 = vmatpush.bf16.msrb.mxu1 %v831_v44 }
  0x3b   :  { %323 = vmatmul.bf16.vlgmr.msra.gmra.mxu0 %v151_v40  ;;  %337 = vmatmul.bf16.vlgmr.msra.gmra.mxu1 %v152_v41 }
  0x3c   :  { %351 = vmatmul.bf16.vlgmr.msra.gmra.mxu2 %v151_v40  ;;  %365 = vmatmul.bf16.vlgmr.msra.gmra.mxu3 %v152_v41 }
  0x3d   :  { %542 = vmatpush.bf16.msrb.mxu0 %v822_v43 }
  0x3e   :  { %556 = vmatpush.bf16.msrb.mxu1 %v830_v46 }
  0x41   :  { %543 = vmatpush.bf16.msrb.mxu0 %v821_v45 }
  0x42   :  { %557 = vmatpush.bf16.msrb.mxu1 %v829_v48 }
  0x45   :  { %544 = vmatpush.bf16.msrb.mxu0 %v820_v47 }
  0x46   :  { %558 = vmatpush.bf16.msrb.mxu1 %v828_v51 }
  0x49   :  { %545 = vmatpush.bf16.msrb.mxu0 %v819_v49 }
  0x4a   :  { %559 = vmatpush.bf16.msrb.mxu1 %v827_v54 }
  0x4d   :  { %546 = vmatpush.bf16.msrb.mxu0 %v818_v53 }
  0x4e   :  { %560 = vmatpush.bf16.msrb.mxu1 %v826_v60 }
  0x51   :  { %547 = vmatpush.bf16.msrb.mxu0 %v817_v58 }
  0x52   :  { %561 = vmatpush.bf16.msrb.mxu1 %v825_v3 }
  0x55   :  { %548 = vmatpush.bf16.msrb.mxu0 %v816_v63 }
  0x56   :  { %562 = vmatpush.bf16.msrb.mxu1 %v824_v10 }
  0xb8   :  { %v324_v55 = vpop.f32.mrf.mxu0  ;;  %v338_v56 = vpop.f32.mrf.mxu1 }
  0xb9   :  { %v325_v57 = vadd.f32 %v324_v55, %v124_v52 }
  0xbb   :  { %v339_v59 = vadd.f32 %v338_v56, %v325_v57 }
  0xbd   :  { %v371_v62 = vmin.f32 %v339_v59, 20.0 }
  0xbf   :  { %v375_v0 = vmul.f32 1.442695, %v371_v62  ;;  %v352_v1 = vpop.f32.mrf.mxu2  ;;  %v366_v2 = vpop.f32.mrf.mxu3 }
  0xc0   :  { %v353_v4 = vadd.f32 %v352_v1, %v125_v61  ;;  %v326_v5 = vpop.f32.mrf.mxu0  ;;  %v340_v8 = vpop.f32.mrf.mxu1 }
  0xc1   :  { %844 = vpow2.f32 %v375_v0  ;;  %v327_v6 = vadd.f32 %v326_v5, %v124_v52  ;;  %v843_v52 = vld [vmem:[%s1057_s4] ss:$0 sm:$0xff] }
  0xc2   :  { %v367_v7 = vadd.f32 %v366_v2, %v353_v4 }
  0xc3   :  { %v341_v9 = vadd.f32 %v340_v8, %v327_v6 }
  0xc4   :  { %v372_v11 = vmin.f32 %v367_v7, 20.0 }
  0xc5   :  { %v373_v12 = vmin.f32 %v341_v9, 20.0 }
  0xc6   :  { %v377_v13 = vmul.f32 1.442695, %v372_v11 }
  0xc7   :  { %v845_v14 = vpop.eup %844  ;;  %v379_v15 = vmul.f32 1.442695, %v373_v12  ;;  %v354_v16 = vpop.f32.mrf.mxu2 }
  0xc8   :  { %v383_v17 = vadd.f32 2.0, %v845_v14  ;;  %846 = vpow2.f32 %v377_v13  ;;  %v355_v18 = vadd.f32 %v354_v16, %v125_v61  ;;  %v368_v19 = vpop.f32.mrf.mxu3 }
  0xc9   :  { %848 = vpow2.f32 %v379_v15 }
  0xca   :  { %v369_v20 = vadd.f32 %v368_v19, %v355_v18  ;;  %v387_v21 = vmul.f32 %v845_v14, %v383_v17 }
  0xcc   :  { %v374_v22 = vmin.f32 %v369_v20, 20.0  ;;  %v395_v27 = vadd.f32 2.0, %v387_v21  ;;  %v391_v37 = vmul.f32 %v387_v21, %v339_v59 }
  0xce   :  { %v847_v23 = vpop.eup %846  ;;  %v381_v24 = vmul.f32 1.442695, %v374_v22 }
  0xcf   :  { %v849_v25 = vpop.eup %848  ;;  %v384_v26 = vadd.f32 2.0, %v847_v23 }
  0xd0   :  { %v385_v28 = vadd.f32 2.0, %v849_v25  ;;  %850 = vpow2.f32 %v381_v24 }
  0xd1   :  { %v388_v30 = vmul.f32 %v847_v23, %v384_v26  ;;  %852 = vrcp.f32 %v395_v27 }
  0xd2   :  { %v389_v29 = vmul.f32 %v849_v25, %v385_v28 }
  0xd3   :  { %v396_v33 = vadd.f32 2.0, %v388_v30  ;;  %v392_v45 = vmul.f32 %v388_v30, %v367_v7 }
  0xd4   :  { %v397_v31 = vadd.f32 2.0, %v389_v29  ;;  %v393_v38 = vmul.f32 %v389_v29, %v341_v9 }
  0xd6   :  { %v851_v32 = vpop.eup %850  ;;  %854 = vrcp.f32 %v397_v31 }
  0xd7   :  { %v386_v34 = vadd.f32 2.0, %v851_v32  ;;  %v853_v36 = vpop.eup %852  ;;  %856 = vrcp.f32 %v396_v33 }
  0xd8   :  { %v403_v41 = vmul.f32 %v853_v36, %v391_v37 }
  0xd9   :  { %v390_v35 = vmul.f32 %v851_v32, %v386_v34 }
  0xdb   :  { %v398_v39 = vadd.f32 2.0, %v390_v35  ;;  %v394_v46 = vmul.f32 %v390_v35, %v369_v20 }
  0xdc   :  { %v855_v40 = vpop.eup %854 }
  0xdd   :  { %v405_v42 = vmul.f32 %v855_v40, %v393_v38  ;;  %858 = vrcp.f32 %v398_v39  ;;  %v857_v44 = vpop.eup %856 }
  0xde   :  { %v404_v48 = vmul.f32 %v857_v44, %v392_v45 }
  0xdf   :  { %v407_v43 = vpack.c.bf16 %v405_v42, %v403_v41 }
  0xe1   :  { %549 = vmatmul.bf16.vlgmr.msrb.gmra.mxu0 %v407_v43 }
  0xe3   :  { %v859_v47 = vpop.eup %858 }
  0xe4   :  { %v406_v49 = vmul.f32 %v859_v47, %v394_v46 }
  0xe6   :  { %v408_v50 = vpack.c.bf16 %v406_v49, %v404_v48 }
  0xe8   :  { %563 = vmatmul.bf16.vlgmr.msrb.gmra.mxu1 %v408_v50 }
 0x15e   :  { %v550_v51 = vpop.f32.mrf.mxu0 }
 0x15f   :  { %v551_v53 = vadd.f32 %v843_v52, %v550_v51 }
 0x165   :  { %v564_v54 = vpop.f32.mrf.mxu1 }
 0x166   :  { %v565_v55 = vadd.f32 %v564_v54, %v551_v53  ;;  %v552_v56 = vpop.f32.mrf.mxu0 }
 0x167   :  { %v553_v57 = vadd.f32 %v843_v52, %v552_v56 }
 0x168   :  { %569 = vst [vmem:[#allocation10] sm:$0xff] %v565_v55 }
 0x16d   :  { %v566_v58 = vpop.f32.mrf.mxu1 }
 0x16e   :  { %v567_v59 = vadd.f32 %v566_v58, %v553_v57 }
 0x170   :  { %570 = vst [vmem:[#allocation10 + $0x8] sm:$0xff] %v567_v59 }
 0x171   :  { %574 = vsyncadd [#allocation4], 224  ;;  %s577_s19 = sshll.u32 %s1058_s5, 4  ;;  %s998_s20 = smov [#allocation10]   ;;  %s578_s19 = int_to_ptr.hbm [resolvable:$true] %s577_s19 }
 0x172   :  { %s575_s21 = sshll.u32 %s998_s20, 4  ;;  %s576_s21 = int_to_ptr.vmem [resolvable:$true] %s575_s21 }
 0x173   :  { %583 = dma.vmem_to_hbm [thread:$0]  %s576_s21, 32, %s578_s19, [#allocation4], %s992_s30, %s992_s30, %s993_s6  }
 0x174   :  { %986 = dma.done.wait [#allocation4], 256  }
 0x175   :  { %987 = vsyncadd [#allocation4], 4294967040 }
 0x176   :  { %588 = vsyncpa [#allocation3], 1 }
 0x177   :  { %589 = vsyncpa [#allocation6], 1 }
 0x178   :  { %590 = vsyncpa [#allocation9], 1 }
 0x179   :  { %591 = vsyncpa [#allocation4], 1 }

</bundles_post_ra>
